<compile_context>
chip_gen: v7x
topology: tpu7x:2x2x1
jax: 0.10.0
libtpu: 0.0.40
codegen_flags: <defaults>
</compile_context>

<pallas_src>
import jax
import jax.numpy as jnp
from jax.experimental import pallas as pl
from jax.experimental.pallas import tpu as pltpu


# ----------------------------------------------------------------------------
# Kernel: all highway layers fused, weights resident in VMEM.
# ----------------------------------------------------------------------------
def _highway_kernel(x_ref, w_ref, b_ref, o_ref):
    # x_ref: (tm, D)  f32   row tile of activations
    # w_ref: (L, D, 2D) bf16 pre-transposed per-layer weights (resident, 1-buffered)
    # b_ref: (L, 1, 2D) f32  per-layer biases (resident, 1-buffered)
    D = x_ref.shape[-1]
    L = w_ref.shape[0]

    x = x_ref[...]                                              # fp32 (tm, D)

    def layer(l, x):
        # MXU matmul in bf16, fp32 accumulation; bias add in fp32.
        proj = jnp.dot(x.astype(jnp.bfloat16), w_ref[l],
                       preferred_element_type=jnp.float32) + b_ref[l]   # (tm, 2D)
        h = jnp.maximum(proj[:, :D], 0.0)                       # relu branch (VPU)
        # sigmoid via a single tanh EUP op: sigmoid(z) = 0.5*tanh(0.5*z) + 0.5
        g = 0.5 * jnp.tanh(0.5 * proj[:, D:]) + 0.5             # gate
        return h + g * (x - h)                                  # == g*x + (1-g)*h

    if L <= 4:
        # Tiny L: static unroll (indices static, no loop overhead).
        for l in range(L):
            x = layer(l, x)
    else:
        # Larger L: bound live ranges / code size with a real loop.
        x = jax.lax.fori_loop(0, L, layer, x)

    o_ref[...] = x.astype(o_ref.dtype)


# ----------------------------------------------------------------------------
# Tile / VMEM sizing (generation-aware).
# ----------------------------------------------------------------------------
def _round_up(x, m):
    return ((x + m - 1) // m) * m


def _vmem_budget_bytes():
    """Usable VMEM budget for this kernel (leave headroom for compiler scratch)."""
    cap = 64 * 1024 * 1024          # conservative default (v7x: 64 MiB per TC)
    try:
        info = pltpu.get_tpu_info()
        cap = int(getattr(info, "vmem_capacity_bytes", cap))
    except Exception:
        pass
    return (cap * 3) // 4           # ~75% of physical


def _choose_tm_and_vmem(n_rows, D, L, tm_req=512):
    """Pick the row tile from an explicit VMEM budget and return that budget
    as the vmem_limit to hand to the compiler."""
    budget = _vmem_budget_bytes()

    # Resident (single-buffered) operands: bf16 weights + f32 biases.
    fixed = L * D * (2 * D) * 2 + L * (2 * D) * 4
    # Per-row bytes: double-buffered x/out tiles (2*4 + 2*4)*D, the (tm, 2D)
    # fp32 proj temporary (8*D), bf16 cast (2*D) and h/g temporaries (~8*D).
    per_row = 36 * D

    tm_cap = max((budget - fixed) // per_row, 8)
    tm_cap = max((tm_cap // 8) * 8, 8)

    tm = min(_round_up(tm_req, 8), tm_cap, _round_up(n_rows, 8))
    # Keep >= 4 grid steps when there is enough work: >= 2 pipelined steps per
    # TensorCore on dual-TC chips (v7x), so input prefetch / output writeback
    # still overlap compute inside each core.
    if n_rows >= 4 * 128 and pl.cdiv(n_rows, tm) < 4:
        tm = _round_up(pl.cdiv(n_rows, 4), 8)
    tm = max(min(tm, _round_up(n_rows, 8)), 8)

    needed = fixed + per_row * tm + (2 << 20)          # + ~2 MiB slack
    vmem_limit = int(min(budget, max(needed, 32 << 20)))
    return tm, vmem_limit


# ----------------------------------------------------------------------------
# Forward wrapper.
# ----------------------------------------------------------------------------
def highway_forward(inputs, w_stack, b_stack, *, tm_req=512):
    """inputs: [..., D] float32.
    w_stack: (L, D, 2D) bf16 pre-transposed weights (see prepare_highway_params).
    b_stack: (L, 1, 2D) f32 biases."""
    orig_shape = inputs.shape
    D = orig_shape[-1]
    x = inputs.reshape(-1, D)
    N = x.shape[0]
    L = w_stack.shape[0]

    tm, vmem_limit = _choose_tm_and_vmem(N, D, L, tm_req)
    grid = (pl.cdiv(N, tm),)   # partial final tile is masked by Pallas; no pad/copy

    def build(single_buffer_consts):
        const_kw = (dict(pipeline_mode=pl.Buffered(1))
                    if single_buffer_consts else {})
        return pl.pallas_call(
            _highway_kernel,
            out_shape=jax.ShapeDtypeStruct((N, D), x.dtype),
            grid_spec=pltpu.PrefetchScalarGridSpec(
                num_scalar_prefetch=0,
                grid=grid,
                in_specs=[
                    pl.BlockSpec((tm, D), lambda i: (i, 0)),            # x row tile
                    pl.BlockSpec((L, D, 2 * D), lambda i: (0, 0, 0),    # weights
                                 **const_kw),
                    pl.BlockSpec((L, 1, 2 * D), lambda i: (0, 0, 0),    # biases
                                 **const_kw),
                ],
                out_specs=pl.BlockSpec((tm, D), lambda i: (i, 0)),
            ),
            compiler_params=pltpu.CompilerParams(
                dimension_semantics=("parallel",),
                vmem_limit_bytes=vmem_limit),
        )

    try:
        out = build(True)(x, w_stack, b_stack)
    except Exception:
        # Fallback: default (double-buffered) specs if single-buffering the
        # grid-invariant operands is rejected by this JAX/Mosaic version.
        out = build(False)(x, w_stack, b_stack)
    return out.reshape(orig_shape)


# ----------------------------------------------------------------------------
# Parameter prep (done ONCE, outside the per-forward path).
# ----------------------------------------------------------------------------
def prepare_highway_params(params, input_dim):
    """params: list of (W [2D, D], b [2D]) as in nn.Linear(D, 2D).
    Returns stacked, pre-transposed bf16 (L, D, 2D) weights and f32 (L, 1, 2D) biases."""
    del input_dim  # shapes carry it
    w_stack = jnp.stack([W.T for (W, b) in params], axis=0).astype(jnp.bfloat16)
    b_stack = jnp.stack([b.reshape(1, -1) for (W, b) in params], 0).astype(jnp.float32)
    return w_stack, b_stack


def init_highway_params(key, input_dim, num_layers):
    """Deterministic init matching nn.Linear(input_dim, 2*input_dim) shapes,
    with bias[input_dim:] filled with 1 (as in Highway.__init__)."""
    params = []
    bound = 1.0 / jnp.sqrt(jnp.float32(input_dim))
    for _ in range(num_layers):
        kw, kb, key = jax.random.split(key, 3)
        W = jax.random.uniform(kw, (2 * input_dim, input_dim),
                               jnp.float32, -bound, bound)
        b = jax.random.uniform(kb, (2 * input_dim,), jnp.float32, -bound, bound)
        b = b.at[input_dim:].set(1.0)
        params.append((W, b))
    return params


def highway_reference(inputs, params):
    """Pure-JAX fp32 reference mirroring the PyTorch forward."""
    x = inputs
    D = x.shape[-1]
    for (W, b) in params:
        proj = x @ W.T + b
        h = jax.nn.relu(proj[..., :D])
        g = jax.nn.sigmoid(proj[..., D:])
        x = g * x + (1.0 - g) * h
    return x


if __name__ == "__main__":
    key = jax.random.PRNGKey(0)
    input_dim = 128
    num_layers = 2
    batch, seq = 2, 8

    k_in, k_p = jax.random.split(key)
    x = jax.random.normal(k_in, (batch, seq, input_dim), dtype=jnp.float32)
    params = init_highway_params(k_p, input_dim, num_layers)

    # One-time weight prep (pre-transpose + stack + bf16 cast), outside the forward path.
    w_stack, b_stack = prepare_highway_params(params, input_dim)

    out = highway_forward(x, w_stack, b_stack)
    out = jax.block_until_ready(out)

    ref = highway_reference(x, params)
    assert out.shape == x.shape
    # Tolerance loosened for the bf16-matmul / fp32-accumulate path.
    assert jnp.allclose(out, ref, atol=5e-2, rtol=5e-2), "mismatch vs reference"

    print("KERNEL_OK")
</pallas_src>

<mosaic_0001>
module attributes {stable_mosaic.version = 11 : i64} {
  func.func @_highway_kernel(%arg0: i32, %arg1: memref<16x128xf32, #tpu.memory_space<vmem>>, %arg2: memref<2x128x256xbf16, #tpu.memory_space<vmem>>, %arg3: memref<2x1x256xf32, #tpu.memory_space<vmem>>, %arg4: memref<16x128xf32, #tpu.memory_space<vmem>>) attributes {dimension_semantics = [#tpu.dimension_semantics<parallel>], iteration_bounds = array<i64: 1>, scalar_prefetch = 0 : i64, scratch_operands = 0 : i64, tpu.core_type = #tpu.core_type<tc>, window_params = [{transform_indices = @transform_0, window_bounds = array<i64: 16, 128>}, {pipeline_mode = #tpu.pipeline_mode<synchronous>, transform_indices = @transform_1, window_bounds = array<i64: 2, 128, 256>}, {pipeline_mode = #tpu.pipeline_mode<synchronous>, transform_indices = @transform_2, window_bounds = array<i64: 2, 1, 256>}, {transform_indices = @transform_3, window_bounds = array<i64: 16, 128>}]} {
    %c0 = arith.constant 0 : index
    %c0_0 = arith.constant 0 : index
    %0 = vector.load %arg1[%c0, %c0_0] : memref<16x128xf32, #tpu.memory_space<vmem>>, vector<16x128xf32>
    %1 = arith.truncf %0 : vector<16x128xf32> to vector<16x128xbf16>
    %c0_1 = arith.constant 0 : index
    %c0_2 = arith.constant 0 : index
    %c0_3 = arith.constant 0 : index
    %2 = vector.load %arg2[%c0_1, %c0_2, %c0_3] : memref<2x128x256xbf16, #tpu.memory_space<vmem>>, vector<1x128x256xbf16>
    %3 = vector.shape_cast %2 : vector<1x128x256xbf16> to vector<128x256xbf16>
    %cst = arith.constant dense<0.000000e+00> : vector<16x256xf32>
    %4 = tpu.matmul %1, %3, %cst {dimension_numbers = #tpu.dot_dimension_numbers<[1], [0], [0], [1], [0, 0, 1, 1], [], []>} : vector<16x128xbf16>, vector<128x256xbf16>, vector<16x256xf32> -> vector<16x256xf32>
    %c0_4 = arith.constant 0 : index
    %c0_5 = arith.constant 0 : index
    %c0_6 = arith.constant 0 : index
    %5 = vector.load %arg3[%c0_4, %c0_5, %c0_6] : memref<2x1x256xf32, #tpu.memory_space<vmem>>, vector<1x1x256xf32>
    %6 = vector.shape_cast %5 : vector<1x1x256xf32> to vector<1x256xf32>
    %7 = vector.broadcast %6 : vector<1x256xf32> to vector<16x256xf32>
    %8 = arith.addf %4, %7 : vector<16x256xf32>
    %9 = vector.extract_strided_slice %8 {offsets = [0, 0], sizes = [16, 128], strides = [1, 1]} : vector<16x256xf32> to vector<16x128xf32>
    %cst_7 = arith.constant 0.000000e+00 : f32
    %10 = vector.broadcast %cst_7 : f32 to vector<16x128xf32>
    %11 = arith.maximumf %9, %10 : vector<16x128xf32>
    %12 = vector.extract_strided_slice %8 {offsets = [0, 128], sizes = [16, 128], strides = [1, 1]} : vector<16x256xf32> to vector<16x128xf32>
    %cst_8 = arith.constant 5.000000e-01 : f32
    %13 = vector.broadcast %cst_8 : f32 to vector<16x128xf32>
    %14 = arith.mulf %13, %12 : vector<16x128xf32>
    %15 = math.tanh %14 : vector<16x128xf32>
    %cst_9 = arith.constant 5.000000e-01 : f32
    %16 = vector.broadcast %cst_9 : f32 to vector<16x128xf32>
    %17 = arith.mulf %16, %15 : vector<16x128xf32>
    %cst_10 = arith.constant 5.000000e-01 : f32
    %18 = vector.broadcast %cst_10 : f32 to vector<16x128xf32>
    %19 = arith.addf %17, %18 : vector<16x128xf32>
    %20 = arith.subf %0, %11 : vector<16x128xf32>
    %21 = arith.mulf %19, %20 : vector<16x128xf32>
    %22 = arith.addf %11, %21 : vector<16x128xf32>
    %23 = arith.truncf %22 : vector<16x128xf32> to vector<16x128xbf16>
    %c1 = arith.constant 1 : index
    %c0_11 = arith.constant 0 : index
    %c0_12 = arith.constant 0 : index
    %24 = vector.load %arg2[%c1, %c0_11, %c0_12] : memref<2x128x256xbf16, #tpu.memory_space<vmem>>, vector<1x128x256xbf16>
    %25 = vector.shape_cast %24 : vector<1x128x256xbf16> to vector<128x256xbf16>
    %cst_13 = arith.constant dense<0.000000e+00> : vector<16x256xf32>
    %26 = tpu.matmul %23, %25, %cst_13 {dimension_numbers = #tpu.dot_dimension_numbers<[1], [0], [0], [1], [0, 0, 1, 1], [], []>} : vector<16x128xbf16>, vector<128x256xbf16>, vector<16x256xf32> -> vector<16x256xf32>
    %c1_14 = arith.constant 1 : index
    %c0_15 = arith.constant 0 : index
    %c0_16 = arith.constant 0 : index
    %27 = vector.load %arg3[%c1_14, %c0_15, %c0_16] : memref<2x1x256xf32, #tpu.memory_space<vmem>>, vector<1x1x256xf32>
    %28 = vector.shape_cast %27 : vector<1x1x256xf32> to vector<1x256xf32>
    %29 = vector.broadcast %28 : vector<1x256xf32> to vector<16x256xf32>
    %30 = arith.addf %26, %29 : vector<16x256xf32>
    %31 = vector.extract_strided_slice %30 {offsets = [0, 0], sizes = [16, 128], strides = [1, 1]} : vector<16x256xf32> to vector<16x128xf32>
    %cst_17 = arith.constant 0.000000e+00 : f32
    %32 = vector.broadcast %cst_17 : f32 to vector<16x128xf32>
    %33 = arith.maximumf %31, %32 : vector<16x128xf32>
    %34 = vector.extract_strided_slice %30 {offsets = [0, 128], sizes = [16, 128], strides = [1, 1]} : vector<16x256xf32> to vector<16x128xf32>
    %cst_18 = arith.constant 5.000000e-01 : f32
    %35 = vector.broadcast %cst_18 : f32 to vector<16x128xf32>
    %36 = arith.mulf %35, %34 : vector<16x128xf32>
    %37 = math.tanh %36 : vector<16x128xf32>
    %cst_19 = arith.constant 5.000000e-01 : f32
    %38 = vector.broadcast %cst_19 : f32 to vector<16x128xf32>
    %39 = arith.mulf %38, %37 : vector<16x128xf32>
    %cst_20 = arith.constant 5.000000e-01 : f32
    %40 = vector.broadcast %cst_20 : f32 to vector<16x128xf32>
    %41 = arith.addf %39, %40 : vector<16x128xf32>
    %42 = arith.subf %22, %33 : vector<16x128xf32>
    %43 = arith.mulf %41, %42 : vector<16x128xf32>
    %44 = arith.addf %33, %43 : vector<16x128xf32>
    %c0_21 = arith.constant 0 : index
    %c0_22 = arith.constant 0 : index
    %45 = vector.load %arg4[%c0_21, %c0_22] : memref<16x128xf32, #tpu.memory_space<vmem>>, vector<16x128xf32>
    tpu.vector_store %arg4[%c0_21, %c0_22], %44 {strides = array<i32>} : memref<16x128xf32, #tpu.memory_space<vmem>>, vector<16x128xf32>,
    return
  }
  func.func @transform_0(%arg0: i32) -> (i32, i32) {
    %c0_i32 = arith.constant 0 : i32
    %c0_i32_0 = arith.constant 0 : i32
    return %arg0, %c0_i32 : i32, i32
  }
  func.func @transform_1(%arg0: i32) -> (i32, i32, i32) {
    %c0_i32 = arith.constant 0 : i32
    %c0_i32_0 = arith.constant 0 : i32
    %c0_i32_1 = arith.constant 0 : i32
    %c0_i32_2 = arith.constant 0 : i32
    return %c0_i32, %c0_i32_0, %c0_i32_1 : i32, i32, i32
  }
  func.func @transform_2(%arg0: i32) -> (i32, i32, i32) {
    %c0_i32 = arith.constant 0 : i32
    %c0_i32_0 = arith.constant 0 : i32
    %c0_i32_1 = arith.constant 0 : i32
    %c0_i32_2 = arith.constant 0 : i32
    return %c0_i32, %c0_i32_0, %c0_i32_1 : i32, i32, i32
  }
  func.func @transform_3(%arg0: i32) -> (i32, i32) {
    %c0_i32 = arith.constant 0 : i32
    %c0_i32_0 = arith.constant 0 : i32
    return %arg0, %c0_i32 : i32, i32
  }
}

module attributes {stable_mosaic.version = 11 : i64} {
  func.func @_highway_kernel(%arg0: i32, %arg1: memref<16x128xf32, #tpu.memory_space<vmem>>, %arg2: memref<2x128x256xbf16, #tpu.memory_space<vmem>>, %arg3: memref<2x1x256xf32, #tpu.memory_space<vmem>>, %arg4: memref<16x128xf32, #tpu.memory_space<vmem>>) attributes {dimension_semantics = [#tpu.dimension_semantics<parallel>], iteration_bounds = array<i64: 1>, scalar_prefetch = 0 : i64, scratch_operands = 0 : i64, tpu.core_type = #tpu.core_type<tc>, window_params = [{transform_indices = @transform_0, window_bounds = array<i64: 16, 128>}, {pipeline_mode = #tpu.pipeline_mode<synchronous>, transform_indices = @transform_1, window_bounds = array<i64: 2, 128, 256>}, {pipeline_mode = #tpu.pipeline_mode<synchronous>, transform_indices = @transform_2, window_bounds = array<i64: 2, 1, 256>}, {transform_indices = @transform_3, window_bounds = array<i64: 16, 128>}]} {
    %c0 = arith.constant 0 : index
    %c0_0 = arith.constant 0 : index
    %0 = vector.load %arg1[%c0, %c0_0] : memref<16x128xf32, #tpu.memory_space<vmem>>, vector<16x128xf32>
    %1 = arith.truncf %0 : vector<16x128xf32> to vector<16x128xbf16>
    %c0_1 = arith.constant 0 : index
    %c0_2 = arith.constant 0 : index
    %c0_3 = arith.constant 0 : index
    %2 = vector.load %arg2[%c0_1, %c0_2, %c0_3] : memref<2x128x256xbf16, #tpu.memory_space<vmem>>, vector<1x128x256xbf16>
    %3 = vector.shape_cast %2 : vector<1x128x256xbf16> to vector<128x256xbf16>
    %cst = arith.constant dense<0.000000e+00> : vector<16x256xf32>
    %4 = tpu.matmul %1, %3, %cst {dimension_numbers = #tpu.dot_dimension_numbers<[1], [0], [0], [1], [0, 0, 1, 1], [], []>} : vector<16x128xbf16>, vector<128x256xbf16>, vector<16x256xf32> -> vector<16x256xf32>
    %c0_4 = arith.constant 0 : index
    %c0_5 = arith.constant 0 : index
    %c0_6 = arith.constant 0 : index
    %5 = vector.load %arg3[%c0_4, %c0_5, %c0_6] : memref<2x1x256xf32, #tpu.memory_space<vmem>>, vector<1x1x256xf32>
    %6 = vector.shape_cast %5 : vector<1x1x256xf32> to vector<1x256xf32>
    %7 = vector.broadcast %6 : vector<1x256xf32> to vector<16x256xf32>
    %8 = arith.addf %4, %7 : vector<16x256xf32>
    %9 = vector.extract_strided_slice %8 {offsets = [0, 0], sizes = [16, 128], strides = [1, 1]} : vector<16x256xf32> to vector<16x128xf32>
    %cst_7 = arith.constant 0.000000e+00 : f32
    %10 = vector.broadcast %cst_7 : f32 to vector<16x128xf32>
    %11 = arith.maximumf %9, %10 : vector<16x128xf32>
    %12 = vector.extract_strided_slice %8 {offsets = [0, 128], sizes = [16, 128], strides = [1, 1]} : vector<16x256xf32> to vector<16x128xf32>
    %cst_8 = arith.constant 5.000000e-01 : f32
    %13 = vector.broadcast %cst_8 : f32 to vector<16x128xf32>
    %14 = arith.mulf %13, %12 : vector<16x128xf32>
    %15 = math.tanh %14 : vector<16x128xf32>
    %cst_9 = arith.constant 5.000000e-01 : f32
    %16 = vector.broadcast %cst_9 : f32 to vector<16x128xf32>
    %17 = arith.mulf %16, %15 : vector<16x128xf32>
    %cst_10 = arith.constant 5.000000e-01 : f32
    %18 = vector.broadcast %cst_10 : f32 to vector<16x128xf32>
    %19 = arith.addf %17, %18 : vector<16x128xf32>
    %20 = arith.subf %0, %11 : vector<16x128xf32>
    %21 = arith.mulf %19, %20 : vector<16x128xf32>
    %22 = arith.addf %11, %21 : vector<16x128xf32>
    %23 = arith.truncf %22 : vector<16x128xf32> to vector<16x128xbf16>
    %c1 = arith.constant 1 : index
    %c0_11 = arith.constant 0 : index
    %c0_12 = arith.constant 0 : index
    %24 = vector.load %arg2[%c1, %c0_11, %c0_12] : memref<2x128x256xbf16, #tpu.memory_space<vmem>>, vector<1x128x256xbf16>
    %25 = vector.shape_cast %24 : vector<1x128x256xbf16> to vector<128x256xbf16>
    %cst_13 = arith.constant dense<0.000000e+00> : vector<16x256xf32>
    %26 = tpu.matmul %23, %25, %cst_13 {dimension_numbers = #tpu.dot_dimension_numbers<[1], [0], [0], [1], [0, 0, 1, 1], [], []>} : vector<16x128xbf16>, vector<128x256xbf16>, vector<16x256xf32> -> vector<16x256xf32>
    %c1_14 = arith.constant 1 : index
    %c0_15 = arith.constant 0 : index
    %c0_16 = arith.constant 0 : index
    %27 = vector.load %arg3[%c1_14, %c0_15, %c0_16] : memref<2x1x256xf32, #tpu.memory_space<vmem>>, vector<1x1x256xf32>
    %28 = vector.shape_cast %27 : vector<1x1x256xf32> to vector<1x256xf32>
    %29 = vector.broadcast %28 : vector<1x256xf32> to vector<16x256xf32>
    %30 = arith.addf %26, %29 : vector<16x256xf32>
    %31 = vector.extract_strided_slice %30 {offsets = [0, 0], sizes = [16, 128], strides = [1, 1]} : vector<16x256xf32> to vector<16x128xf32>
    %cst_17 = arith.constant 0.000000e+00 : f32
    %32 = vector.broadcast %cst_17 : f32 to vector<16x128xf32>
    %33 = arith.maximumf %31, %32 : vector<16x128xf32>
    %34 = vector.extract_strided_slice %30 {offsets = [0, 128], sizes = [16, 128], strides = [1, 1]} : vector<16x256xf32> to vector<16x128xf32>
    %cst_18 = arith.constant 5.000000e-01 : f32
    %35 = vector.broadcast %cst_18 : f32 to vector<16x128xf32>
    %36 = arith.mulf %35, %34 : vector<16x128xf32>
    %37 = math.tanh %36 : vector<16x128xf32>
    %cst_19 = arith.constant 5.000000e-01 : f32
    %38 = vector.broadcast %cst_19 : f32 to vector<16x128xf32>
    %39 = arith.mulf %38, %37 : vector<16x128xf32>
    %cst_20 = arith.constant 5.000000e-01 : f32
    %40 = vector.broadcast %cst_20 : f32 to vector<16x128xf32>
    %41 = arith.addf %39, %40 : vector<16x128xf32>
    %42 = arith.subf %22, %33 : vector<16x128xf32>
    %43 = arith.mulf %41, %42 : vector<16x128xf32>
    %44 = arith.addf %33, %43 : vector<16x128xf32>
    %c0_21 = arith.constant 0 : index
    %c0_22 = arith.constant 0 : index
    %45 = vector.load %arg4[%c0_21, %c0_22] : memref<16x128xf32, #tpu.memory_space<vmem>>, vector<16x128xf32>
    tpu.vector_store %arg4[%c0_21, %c0_22], %44 {strides = array<i32>} : memref<16x128xf32, #tpu.memory_space<vmem>>, vector<16x128xf32>,
    return
  }
  func.func @transform_0(%arg0: i32) -> (i32, i32) {
    %c0_i32 = arith.constant 0 : i32
    %c0_i32_0 = arith.constant 0 : i32
    return %arg0, %c0_i32 : i32, i32
  }
  func.func @transform_1(%arg0: i32) -> (i32, i32, i32) {
    %c0_i32 = arith.constant 0 : i32
    %c0_i32_0 = arith.constant 0 : i32
    %c0_i32_1 = arith.constant 0 : i32
    %c0_i32_2 = arith.constant 0 : i32
    return %c0_i32, %c0_i32_0, %c0_i32_1 : i32, i32, i32
  }
  func.func @transform_2(%arg0: i32) -> (i32, i32, i32) {
    %c0_i32 = arith.constant 0 : i32
    %c0_i32_0 = arith.constant 0 : i32
    %c0_i32_1 = arith.constant 0 : i32
    %c0_i32_2 = arith.constant 0 : i32
    return %c0_i32, %c0_i32_0, %c0_i32_1 : i32, i32, i32
  }
  func.func @transform_3(%arg0: i32) -> (i32, i32) {
    %c0_i32 = arith.constant 0 : i32
    %c0_i32_0 = arith.constant 0 : i32
    return %arg0, %c0_i32 : i32, i32
  }
}

</mosaic_0001>

<bundles_post_ra>
// kernel: tpu_custom_call.1
= control target key start
LH: loop header
LB: loop body
LE: loop exit
PB: predicated region body
PF: predicated region fallthrough
CT: control target
= control target key end

     0   :  { %8 = vsyncpa [#allocation3], 0  ;;  %s648_s0 = inlined_call_operand.hbm [shape: f32[16,128], index: 0, kind: input, shape index: {}]   ;;  %s649_s1 = inlined_call_operand.hbm [shape: bf16[2,128,256], index: 1, kind: input, shape index: {}]   ;;  %s650_s2 = inlined_call_operand.vmem [shape: f32[2,1,256], index: 2, kind: input, shape index: {}]   ;;  %s651_s3 = inlined_call_operand.hbm [shape: f32[16,128], index: 3, kind: output, shape index: {}]  }
   0x1   :  { %9 = vsyncpa [#allocation6], 0 }
   0x2   :  { %10 = vsyncpa [#allocation4], 0  ;;  %s571_s12 = smov [#allocation2]   ;;  %s499_s16 = scalar_lea.hbm %s648_s0, 256 }
   0x3   :  { %s16_s13 = sshll.u32 %s571_s12, 4  ;;  %p500_p0 = scmp.ne.s32.totalorder %s648_s0, %s499_s16  ;;  %s17_s13 = int_to_ptr.vmem [resolvable:$true] %s16_s13 }
   0x4   :  { %p503_p1 = scmp.lt.u32.totalorder %s499_s16, %s648_s0 }
   0x6   :  { %p505_p2 = pnand %p503_p1, %p500_p0 }
   0x8   :  { %508 = shalt.err (!%p505_p2)
}
   0x9   :  { %s509_s21 = scalar_lea.vmem %s17_s13, 256  ;;  %p514_p4 = scmp.lt.s32.totalorder %s17_s13, %s17_s13 }
   0xa   :  { %p510_p3 = scmp.ne.s32.totalorder %s17_s13, %s509_s21  ;;  %p515_p5 = scmp.lt.s32.totalorder %s509_s21, %s509_s21 }
   0xc   :  { %p516_p6 = por %p515_p5, %p514_p4 }
   0xe   :  { %p517_p7 = pnand %p516_p6, %p510_p3 }
  0x10   :  { %520 = shalt.err (!%p517_p7)
}
  0x11   :  { %s572_s22 = smov 128   ;;  %s573_s23 = smov 8  }
  0x12   :  { %22 = dma.hbm_to_vmem [thread:$0]  %s648_s0, 256, %s17_s13, [#allocation3], %s572_s22, %s572_s22, %s573_s23  }
  0x13   :  { %s574_s26 = smov [#allocation5]   ;;  %s521_s30 = scalar_lea.hbm %s649_s1, 4096 }
  0x14   :  { %s28_s27 = sshll.u32 %s574_s26, 4  ;;  %p522_p8 = scmp.ne.s32.totalorder %s649_s1, %s521_s30  ;;  %s29_s27 = int_to_ptr.vmem [resolvable:$true] %s28_s27 }
  0x15   :  { %p525_p9 = scmp.lt.u32.totalorder %s521_s30, %s649_s1 }
  0x17   :  { %p527_p10 = pnand %p525_p9, %p522_p8 }
  0x19   :  { %530 = shalt.err (!%p527_p10)
}
  0x1a   :  { %s531_s8 = scalar_lea.vmem %s29_s27, 4096  ;;  %p536_p12 = scmp.lt.s32.totalorder %s29_s27, %s29_s27 }
  0x1b   :  { %p532_p11 = scmp.ne.s32.totalorder %s29_s27, %s531_s8  ;;  %p537_p13 = scmp.lt.s32.totalorder %s531_s8, %s531_s8 }
  0x1d   :  { %p538_p0 = por %p537_p13, %p536_p12 }
  0x1f   :  { %p539_p1 = pnand %p538_p0, %p532_p11 }
  0x21   :  { %542 = shalt.err (!%p539_p1)
}
  0x22   :  { %34 = dma.hbm_to_vmem [thread:$0]  %s649_s1, 4096, %s29_s27, [#allocation6], %s572_s22, %s572_s22, %s573_s23  }
  0x23   :  { %565 = dma.done.wait [#allocation3], 256  }
  0x24   :  { %566 = vsyncadd [#allocation3], 4294967040 }
  0x25   :  { %567 = dma.done.wait [#allocation6], 4096  }
  0x26   :  { %568 = vsyncadd [#allocation6], 4294963200  ;;  %v575_v0 = vmov 0   ;;  %v443_v1 = vld [vmem:[#allocation5 + $0x4] ss:$8 sps:$4 sm:$0xff]   ;;  %v44_v19 = vld [vmem:[#allocation2] sm:$0xff]  ;;  %v65_v36 = vlaneseq }
  0x27   :  { %187 = vmatprep.mubr.bf16.mxu0 %v575_v0  ;;  %357 = vmatprep.mubr.bf16.mxu1 %v575_v0  ;;  %v445_v2 = vld [vmem:[#allocation5] ss:$8 sps:$4 sm:$0xff]   ;;  %v446_v3 = vld [vmem:[#allocation5 + $0x14] ss:$8 sps:$4 sm:$0xff]   ;;  %v448_v4 = vld [vmem:[#allocation5 + $0x10] ss:$8 sps:$4 sm:$0xff]  }
  0x28   :  { %155 = vmatprep.subr.bf16.mxu0 %v443_v1  ;;  %v449_v5 = vld [vmem:[#allocation5 + $0x24] ss:$8 sps:$4 sm:$0xff]   ;;  %v451_v6 = vld [vmem:[#allocation5 + $0x20] ss:$8 sps:$4 sm:$0xff]   ;;  %v452_v7 = vld [vmem:[#allocation5 + $0x34] ss:$8 sps:$4 sm:$0xff]  }
  0x29   :  { %156 = vmatpush1.bf16.msra.mxu0 %v445_v2  ;;  %v454_v8 = vld [vmem:[#allocation5 + $0x30] ss:$8 sps:$4 sm:$0xff]   ;;  %v455_v9 = vld [vmem:[#allocation5 + $0x44] ss:$8 sps:$4 sm:$0xff]   ;;  %v469_v11 = vld [vmem:[#allocation5 + $0x80] ss:$8 sps:$4 sm:$0xff]  }
  0x2a   :  { %157 = vmatprep.subr.bf16.mxu0 %v446_v3  ;;  %v467_v10 = vld [vmem:[#allocation5 + $0x84] ss:$8 sps:$4 sm:$0xff]   ;;  %v457_v12 = vld [vmem:[#allocation5 + $0x40] ss:$8 sps:$4 sm:$0xff]   ;;  %v458_v13 = vld [vmem:[#allocation5 + $0x54] ss:$8 sps:$4 sm:$0xff]  }
  0x2b   :  { %325 = vmatprep.subr.bf16.mxu1 %v467_v10  ;;  %v460_v14 = vld [vmem:[#allocation5 + $0x50] ss:$8 sps:$4 sm:$0xff]   ;;  %v461_v15 = vld [vmem:[#allocation5 + $0x64] ss:$8 sps:$4 sm:$0xff]   ;;  %v463_v16 = vld [vmem:[#allocation5 + $0x60] ss:$8 sps:$4 sm:$0xff]  }
  0x2c   :  { %326 = vmatpush1.bf16.msra.mxu1 %v469_v11  ;;  %v464_v17 = vld [vmem:[#allocation5 + $0x74] ss:$8 sps:$4 sm:$0xff]   ;;  %v466_v18 = vld [vmem:[#allocation5 + $0x70] ss:$8 sps:$4 sm:$0xff]   ;;  %v473_v24 = vld [vmem:[#allocation5 + $0xa4] ss:$8 sps:$4 sm:$0xff]  }
  0x2d   :  { %158 = vmatpush1.bf16.msra.mxu0 %v448_v4  ;;  %v45_v20 = vld [vmem:[#allocation2 + $0x8] sm:$0xff]  ;;  %v475_v25 = vld [vmem:[#allocation5 + $0xa0] ss:$8 sps:$4 sm:$0xff]   ;;  %v479_v28 = vld [vmem:[#allocation5 + $0xc4] ss:$8 sps:$4 sm:$0xff]   ;;  %v66_v37 = vshrl.u32 %v65_v36, 7 }
  0x2e   :  { %159 = vmatprep.subr.bf16.mxu0 %v449_v5  ;;  %v46_v21 = vpack.c.bf16 %v45_v20, %v44_v19  ;;  %v470_v22 = vld [vmem:[#allocation5 + $0x94] ss:$8 sps:$4 sm:$0xff]   ;;  %v472_v23 = vld [vmem:[#allocation5 + $0x90] ss:$8 sps:$4 sm:$0xff]   ;;  %v481_v29 = vld [vmem:[#allocation5 + $0xc0] ss:$8 sps:$4 sm:$0xff]  }
  0x2f   :  { %327 = vmatprep.subr.bf16.mxu1 %v470_v22  ;;  %v476_v26 = vld [vmem:[#allocation5 + $0xb4] ss:$8 sps:$4 sm:$0xff]   ;;  %v478_v27 = vld [vmem:[#allocation5 + $0xb0] ss:$8 sps:$4 sm:$0xff]   ;;  %v485_v32 = vld [vmem:[#allocation5 + $0xe4] ss:$8 sps:$4 sm:$0xff]  }
  0x30   :  { %328 = vmatpush1.bf16.msra.mxu1 %v472_v23  ;;  %v482_v30 = vld [vmem:[#allocation5 + $0xd4] ss:$8 sps:$4 sm:$0xff]   ;;  %v484_v31 = vld [vmem:[#allocation5 + $0xd0] ss:$8 sps:$4 sm:$0xff]   ;;  %v487_v33 = vld [vmem:[#allocation5 + $0xe0] ss:$8 sps:$4 sm:$0xff]  }
  0x31   :  { %160 = vmatpush1.bf16.msra.mxu0 %v451_v6  ;;  %329 = vmatprep.subr.bf16.mxu1 %v473_v24  ;;  %v488_v34 = vld [vmem:[#allocation5 + $0xf4] ss:$8 sps:$4 sm:$0xff]   ;;  %v490_v35 = vld [vmem:[#allocation5 + $0xf0] ss:$8 sps:$4 sm:$0xff]   ;;  %v71_v38 = vsub.s32 1, %v66_v37  ;;  %v67_v45 = vsub.s32 0, %v66_v37 }
  0x32   :  { %161 = vmatprep.subr.bf16.mxu0 %v452_v7  ;;  %v63_v39 = vld [vmem:[%s650_s2] sm:$0x3]  ;;  %v420_v4 = vld [vmem:[%s650_s2 + $0x2] sm:$0x3]  ;;  %s576_s2 = smov [#allocation7]  }
  0x33   :  { %v72_v40 = vrot.slane %v63_v39, %v71_v38  ;;  %v68_v50 = vrot.slane %v63_v39, %v67_v45  ;;  %v242_v5 = vrot.slane %v420_v4, %v71_v38  ;;  %s391_s13 = sshll.u32 %s576_s2, 4  ;;  %s392_s13 = int_to_ptr.vmem [resolvable:$true] %s391_s13 }
  0x34   :  { %330 = vmatpush1.bf16.msra.mxu1 %v475_v25  ;;  %s543_s14 = scalar_lea.vmem %s392_s13, 256  ;;  %p548_p3 = scmp.lt.s32.totalorder %s392_s13, %s392_s13 }
  0x35   :  { %162 = vmatpush1.bf16.msra.mxu0 %v454_v8  ;;  %331 = vmatprep.subr.bf16.mxu1 %v476_v26  ;;  %p544_p2 = scmp.ne.s32.totalorder %s392_s13, %s543_s14  ;;  %p549_p4 = scmp.lt.s32.totalorder %s543_s14, %s543_s14 }
  0x36   :  { %163 = vmatprep.subr.bf16.mxu0 %v455_v9 }
  0x37   :  { %p550_p5 = por %p549_p4, %p548_p3 }
  0x38   :  { %332 = vmatpush1.bf16.msra.mxu1 %v478_v27 }
  0x39   :  { %164 = vmatpush1.bf16.msra.mxu0 %v457_v12  ;;  %333 = vmatprep.subr.bf16.mxu1 %v479_v28  ;;  %p551_p6 = pnand %p550_p5, %p544_p2 }
  0x3a   :  { %165 = vmatprep.subr.bf16.mxu0 %v458_v13 }
  0x3c   :  { %334 = vmatpush1.bf16.msra.mxu1 %v481_v29 }
  0x3d   :  { %166 = vmatpush1.bf16.msra.mxu0 %v460_v14  ;;  %335 = vmatprep.subr.bf16.mxu1 %v482_v30  ;;  %v238_v14 = vrot.slane %v420_v4, %v67_v45 }
  0x3e   :  { %167 = vmatprep.subr.bf16.mxu0 %v461_v15 }
  0x40   :  { %336 = vmatpush1.bf16.msra.mxu1 %v484_v31 }
  0x41   :  { %168 = vmatpush1.bf16.msra.mxu0 %v463_v16  ;;  %337 = vmatprep.subr.bf16.mxu1 %v485_v32 }
  0x42   :  { %169 = vmatprep.subr.bf16.mxu0 %v464_v17 }
  0x44   :  { %338 = vmatpush1.bf16.msra.mxu1 %v487_v33 }
  0x45   :  { %170 = vmatpush1.bf16.msra.mxu0 %v466_v18  ;;  %339 = vmatprep.subr.bf16.mxu1 %v488_v34 }
  0x48   :  { %188 = vmatmul.mubr.bf16.vlgmr.msra.gmra.mrb[0].mxu0 %v46_v21  ;;  %340 = vmatpush1.bf16.msra.mxu1 %v490_v35 }
 0x11b   :  { %v189_v41 = vpop.f32.mrb[0].mxu0 }
 0x11c   :  { %v191_v42 = vpop.f32.mrb[1].mxu0  ;;  %v190_v51 = vadd.f32 %v189_v41, %v68_v50 }
 0x11d   :  { %v192_v43 = vadd.f32 %v191_v42, %v72_v40  ;;  %v193_v44 = vpop.f32.mrb[2].mxu0 }
 0x11e   :  { %v195_v46 = vpop.f32.mrb[3].mxu0  ;;  %v194_v52 = vadd.f32 %v193_v44, %v68_v50  ;;  %v198_v53 = vmax.f32 %v190_v51, 0.0 }
 0x11f   :  { %v200_v47 = vmul.f32 0.5, %v192_v43  ;;  %v196_v48 = vadd.f32 %v195_v46, %v72_v40 }
 0x120   :  { %v199_v56 = vmax.f32 %v194_v52, 0.0  ;;  %v208_v58 = vsub.f32 %v44_v19, %v198_v53 }
 0x121   :  { %491 = vtanh.f32 %v200_v47  ;;  %v201_v49 = vmul.f32 0.5, %v196_v48 }
 0x122   :  { %v209_v62 = vsub.f32 %v45_v20, %v199_v56 }
 0x123   :  { %493 = vtanh.f32 %v201_v49 }
 0x12b   :  { %v492_v54 = vpop.eup %491 }
 0x12c   :  { %v204_v55 = vmul.f32 0.5, %v492_v54 }
 0x12d   :  { %v494_v57 = vpop.eup %493 }
 0x12e   :  { %v206_v59 = vadd.f32 0.5, %v204_v55  ;;  %v205_v60 = vmul.f32 0.5, %v494_v57 }
 0x130   :  { %v210_v61 = vmul.f32 %v208_v58, %v206_v59  ;;  %v207_v63 = vadd.f32 0.5, %v205_v60 }
 0x132   :  { %v211_v0 = vmul.f32 %v209_v62, %v207_v63  ;;  %v212_v1 = vadd.f32 %v210_v61, %v198_v53 }
 0x134   :  { %v213_v2 = vadd.f32 %v211_v0, %v199_v56 }
 0x136   :  { %v214_v3 = vpack.c.bf16 %v213_v2, %v212_v1 }
 0x138   :  { %358 = vmatmul.mubr.bf16.vlgmr.msra.gmra.mrb[0].mxu1 %v214_v3 }
 0x20b   :  { %v359_v6 = vpop.f32.mrb[0].mxu1 }
 0x20c   :  { %v361_v7 = vpop.f32.mrb[1].mxu1  ;;  %v360_v15 = vadd.f32 %v359_v6, %v238_v14 }
 0x20d   :  { %v362_v8 = vadd.f32 %v361_v7, %v242_v5  ;;  %v363_v9 = vpop.f32.mrb[2].mxu1 }
 0x20e   :  { %v365_v10 = vpop.f32.mrb[3].mxu1  ;;  %v364_v16 = vadd.f32 %v363_v9, %v238_v14  ;;  %v368_v17 = vmax.f32 %v360_v15, 0.0 }
 0x20f   :  { %v370_v11 = vmul.f32 0.5, %v362_v8  ;;  %v366_v12 = vadd.f32 %v365_v10, %v242_v5 }
 0x210   :  { %v369_v20 = vmax.f32 %v364_v16, 0.0  ;;  %v378_v22 = vsub.f32 %v212_v1, %v368_v17 }
 0x211   :  { %495 = vtanh.f32 %v370_v11  ;;  %v371_v13 = vmul.f32 0.5, %v366_v12 }
 0x212   :  { %v379_v26 = vsub.f32 %v213_v2, %v369_v20 }
 0x213   :  { %497 = vtanh.f32 %v371_v13 }
 0x21b   :  { %v496_v18 = vpop.eup %495 }
 0x21c   :  { %v374_v19 = vmul.f32 0.5, %v496_v18 }
 0x21d   :  { %v498_v21 = vpop.eup %497 }
 0x21e   :  { %v376_v23 = vadd.f32 0.5, %v374_v19  ;;  %v375_v24 = vmul.f32 0.5, %v498_v21 }
 0x220   :  { %v380_v25 = vmul.f32 %v378_v22, %v376_v23  ;;  %v377_v27 = vadd.f32 0.5, %v375_v24 }
 0x222   :  { %v381_v28 = vmul.f32 %v379_v26, %v377_v27  ;;  %v382_v29 = vadd.f32 %v380_v25, %v368_v17 }
 0x224   :  { %v383_v30 = vadd.f32 %v381_v28, %v369_v20  ;;  %384 = vst [vmem:[#allocation7] sm:$0xff] %v382_v29 }
 0x226   :  { %385 = vst [vmem:[#allocation7 + $0x8] sm:$0xff] %v383_v30 }
 0x227   :  { %554 = shalt.err (!%p551_p6)
}
 0x228   :  { %s555_s17 = scalar_lea.hbm %s651_s3, 256 }
 0x229   :  { %p556_p7 = scmp.ne.s32.totalorder %s651_s3, %s555_s17  ;;  %p559_p8 = scmp.lt.u32.totalorder %s555_s17, %s651_s3 }
 0x22b   :  { %p561_p9 = pnand %p559_p8, %p556_p7 }
 0x22d   :  { %564 = shalt.err (!%p561_p9)
}
 0x22e   :  { %397 = dma.vmem_to_hbm [thread:$0]  %s392_s13, 256, %s651_s3, [#allocation4], %s572_s22, %s572_s22, %s573_s23  }
 0x22f   :  { %569 = dma.done.wait [#allocation4], 256  }
 0x230   :  { %570 = vsyncadd [#allocation4], 4294967040 }
 0x231   :  { %401 = vsyncpa [#allocation3], 1 }
 0x232   :  { %402 = vsyncpa [#allocation6], 1 }
 0x233   :  { %403 = vsyncpa [#allocation4], 1 }

// kernel: tpu_custom_call.1
= control target key start
LH: loop header
LB: loop body
LE: loop exit
PB: predicated region body
PF: predicated region fallthrough
CT: control target
= control target key end

     0   :  { %8 = vsyncpa [#allocation3], 0  ;;  %s648_s0 = inlined_call_operand.hbm [shape: f32[16,128], index: 0, kind: input, shape index: {}]   ;;  %s649_s1 = inlined_call_operand.hbm [shape: bf16[2,128,256], index: 1, kind: input, shape index: {}]   ;;  %s650_s2 = inlined_call_operand.vmem [shape: f32[2,1,256], index: 2, kind: input, shape index: {}]   ;;  %s651_s3 = inlined_call_operand.hbm [shape: f32[16,128], index: 3, kind: output, shape index: {}]  }
   0x1   :  { %9 = vsyncpa [#allocation6], 0 }
   0x2   :  { %10 = vsyncpa [#allocation4], 0  ;;  %s571_s12 = smov [#allocation2]   ;;  %s499_s16 = scalar_lea.hbm %s648_s0, 256 }
   0x3   :  { %s16_s13 = sshll.u32 %s571_s12, 4  ;;  %p500_p0 = scmp.ne.s32.totalorder %s648_s0, %s499_s16  ;;  %s17_s13 = int_to_ptr.vmem [resolvable:$true] %s16_s13 }
   0x4   :  { %p503_p1 = scmp.lt.u32.totalorder %s499_s16, %s648_s0 }
   0x6   :  { %p505_p2 = pnand %p503_p1, %p500_p0 }
   0x8   :  { %508 = shalt.err (!%p505_p2)
}
   0x9   :  { %s509_s21 = scalar_lea.vmem %s17_s13, 256  ;;  %p514_p4 = scmp.lt.s32.totalorder %s17_s13, %s17_s13 }
   0xa   :  { %p510_p3 = scmp.ne.s32.totalorder %s17_s13, %s509_s21  ;;  %p515_p5 = scmp.lt.s32.totalorder %s509_s21, %s509_s21 }
   0xc   :  { %p516_p6 = por %p515_p5, %p514_p4 }
   0xe   :  { %p517_p7 = pnand %p516_p6, %p510_p3 }
  0x10   :  { %520 = shalt.err (!%p517_p7)
}
  0x11   :  { %s572_s22 = smov 128   ;;  %s573_s23 = smov 8  }
  0x12   :  { %22 = dma.hbm_to_vmem [thread:$0]  %s648_s0, 256, %s17_s13, [#allocation3], %s572_s22, %s572_s22, %s573_s23  }
  0x13   :  { %s574_s26 = smov [#allocation5]   ;;  %s521_s30 = scalar_lea.hbm %s649_s1, 4096 }
  0x14   :  { %s28_s27 = sshll.u32 %s574_s26, 4  ;;  %p522_p8 = scmp.ne.s32.totalorder %s649_s1, %s521_s30  ;;  %s29_s27 = int_to_ptr.vmem [resolvable:$true] %s28_s27 }
  0x15   :  { %p525_p9 = scmp.lt.u32.totalorder %s521_s30, %s649_s1 }
  0x17   :  { %p527_p10 = pnand %p525_p9, %p522_p8 }
  0x19   :  { %530 = shalt.err (!%p527_p10)
}
  0x1a   :  { %s531_s8 = scalar_lea.vmem %s29_s27, 4096  ;;  %p536_p12 = scmp.lt.s32.totalorder %s29_s27, %s29_s27 }
  0x1b   :  { %p532_p11 = scmp.ne.s32.totalorder %s29_s27, %s531_s8  ;;  %p537_p13 = scmp.lt.s32.totalorder %s531_s8, %s531_s8 }
  0x1d   :  { %p538_p0 = por %p537_p13, %p536_p12 }
  0x1f   :  { %p539_p1 = pnand %p538_p0, %p532_p11 }
  0x21   :  { %542 = shalt.err (!%p539_p1)
}
  0x22   :  { %34 = dma.hbm_to_vmem [thread:$0]  %s649_s1, 4096, %s29_s27, [#allocation6], %s572_s22, %s572_s22, %s573_s23  }
  0x23   :  { %565 = dma.done.wait [#allocation3], 256  }
  0x24   :  { %566 = vsyncadd [#allocation3], 4294967040 }
  0x25   :  { %567 = dma.done.wait [#allocation6], 4096  }
  0x26   :  { %568 = vsyncadd [#allocation6], 4294963200  ;;  %v575_v0 = vmov 0   ;;  %v443_v1 = vld [vmem:[#allocation5 + $0x4] ss:$8 sps:$4 sm:$0xff]   ;;  %v44_v19 = vld [vmem:[#allocation2] sm:$0xff]  ;;  %v65_v36 = vlaneseq }
  0x27   :  { %187 = vmatprep.mubr.bf16.mxu0 %v575_v0  ;;  %357 = vmatprep.mubr.bf16.mxu1 %v575_v0  ;;  %v445_v2 = vld [vmem:[#allocation5] ss:$8 sps:$4 sm:$0xff]   ;;  %v446_v3 = vld [vmem:[#allocation5 + $0x14] ss:$8 sps:$4 sm:$0xff]   ;;  %v448_v4 = vld [vmem:[#allocation5 + $0x10] ss:$8 sps:$4 sm:$0xff]  }
  0x28   :  { %155 = vmatprep.subr.bf16.mxu0 %v443_v1  ;;  %v449_v5 = vld [vmem:[#allocation5 + $0x24] ss:$8 sps:$4 sm:$0xff]   ;;  %v451_v6 = vld [vmem:[#allocation5 + $0x20] ss:$8 sps:$4 sm:$0xff]   ;;  %v452_v7 = vld [vmem:[#allocation5 + $0x34] ss:$8 sps:$4 sm:$0xff]  }
  0x29   :  { %156 = vmatpush1.bf16.msra.mxu0 %v445_v2  ;;  %v454_v8 = vld [vmem:[#allocation5 + $0x30] ss:$8 sps:$4 sm:$0xff]   ;;  %v455_v9 = vld [vmem:[#allocation5 + $0x44] ss:$8 sps:$4 sm:$0xff]   ;;  %v469_v11 = vld [vmem:[#allocation5 + $0x80] ss:$8 sps:$4 sm:$0xff]  }
  0x2a   :  { %157 = vmatprep.subr.bf16.mxu0 %v446_v3  ;;  %v467_v10 = vld [vmem:[#allocation5 + $0x84] ss:$8 sps:$4 sm:$0xff]   ;;  %v457_v12 = vld [vmem:[#allocation5 + $0x40] ss:$8 sps:$4 sm:$0xff]   ;;  %v458_v13 = vld [vmem:[#allocation5 + $0x54] ss:$8 sps:$4 sm:$0xff]  }
  0x2b   :  { %325 = vmatprep.subr.bf16.mxu1 %v467_v10  ;;  %v460_v14 = vld [vmem:[#allocation5 + $0x50] ss:$8 sps:$4 sm:$0xff]   ;;  %v461_v15 = vld [vmem:[#allocation5 + $0x64] ss:$8 sps:$4 sm:$0xff]   ;;  %v463_v16 = vld [vmem:[#allocation5 + $0x60] ss:$8 sps:$4 sm:$0xff]  }
  0x2c   :  { %326 = vmatpush1.bf16.msra.mxu1 %v469_v11  ;;  %v464_v17 = vld [vmem:[#allocation5 + $0x74] ss:$8 sps:$4 sm:$0xff]   ;;  %v466_v18 = vld [vmem:[#allocation5 + $0x70] ss:$8 sps:$4 sm:$0xff]   ;;  %v473_v24 = vld [vmem:[#allocation5 + $0xa4] ss:$8 sps:$4 sm:$0xff]  }
  0x2d   :  { %158 = vmatpush1.bf16.msra.mxu0 %v448_v4  ;;  %v45_v20 = vld [vmem:[#allocation2 + $0x8] sm:$0xff]  ;;  %v475_v25 = vld [vmem:[#allocation5 + $0xa0] ss:$8 sps:$4 sm:$0xff]   ;;  %v479_v28 = vld [vmem:[#allocation5 + $0xc4] ss:$8 sps:$4 sm:$0xff]   ;;  %v66_v37 = vshrl.u32 %v65_v36, 7 }
  0x2e   :  { %159 = vmatprep.subr.bf16.mxu0 %v449_v5  ;;  %v46_v21 = vpack.c.bf16 %v45_v20, %v44_v19  ;;  %v470_v22 = vld [vmem:[#allocation5 + $0x94] ss:$8 sps:$4 sm:$0xff]   ;;  %v472_v23 = vld [vmem:[#allocation5 + $0x90] ss:$8 sps:$4 sm:$0xff]   ;;  %v481_v29 = vld [vmem:[#allocation5 + $0xc0] ss:$8 sps:$4 sm:$0xff]  }
  0x2f   :  { %327 = vmatprep.subr.bf16.mxu1 %v470_v22  ;;  %v476_v26 = vld [vmem:[#allocation5 + $0xb4] ss:$8 sps:$4 sm:$0xff]   ;;  %v478_v27 = vld [vmem:[#allocation5 + $0xb0] ss:$8 sps:$4 sm:$0xff]   ;;  %v485_v32 = vld [vmem:[#allocation5 + $0xe4] ss:$8 sps:$4 sm:$0xff]  }
  0x30   :  { %328 = vmatpush1.bf16.msra.mxu1 %v472_v23  ;;  %v482_v30 = vld [vmem:[#allocation5 + $0xd4] ss:$8 sps:$4 sm:$0xff]   ;;  %v484_v31 = vld [vmem:[#allocation5 + $0xd0] ss:$8 sps:$4 sm:$0xff]   ;;  %v487_v33 = vld [vmem:[#allocation5 + $0xe0] ss:$8 sps:$4 sm:$0xff]  }
  0x31   :  { %160 = vmatpush1.bf16.msra.mxu0 %v451_v6  ;;  %329 = vmatprep.subr.bf16.mxu1 %v473_v24  ;;  %v488_v34 = vld [vmem:[#allocation5 + $0xf4] ss:$8 sps:$4 sm:$0xff]   ;;  %v490_v35 = vld [vmem:[#allocation5 + $0xf0] ss:$8 sps:$4 sm:$0xff]   ;;  %v71_v38 = vsub.s32 1, %v66_v37  ;;  %v67_v45 = vsub.s32 0, %v66_v37 }
  0x32   :  { %161 = vmatprep.subr.bf16.mxu0 %v452_v7  ;;  %v63_v39 = vld [vmem:[%s650_s2] sm:$0x3]  ;;  %v420_v4 = vld [vmem:[%s650_s2 + $0x2] sm:$0x3]  ;;  %s576_s2 = smov [#allocation7]  }
  0x33   :  { %v72_v40 = vrot.slane %v63_v39, %v71_v38  ;;  %v68_v50 = vrot.slane %v63_v39, %v67_v45  ;;  %v242_v5 = vrot.slane %v420_v4, %v71_v38  ;;  %s391_s13 = sshll.u32 %s576_s2, 4  ;;  %s392_s13 = int_to_ptr.vmem [resolvable:$true] %s391_s13 }
  0x34   :  { %330 = vmatpush1.bf16.msra.mxu1 %v475_v25  ;;  %s543_s14 = scalar_lea.vmem %s392_s13, 256  ;;  %p548_p3 = scmp.lt.s32.totalorder %s392_s13, %s392_s13 }
  0x35   :  { %162 = vmatpush1.bf16.msra.mxu0 %v454_v8  ;;  %331 = vmatprep.subr.bf16.mxu1 %v476_v26  ;;  %p544_p2 = scmp.ne.s32.totalorder %s392_s13, %s543_s14  ;;  %p549_p4 = scmp.lt.s32.totalorder %s543_s14, %s543_s14 }
  0x36   :  { %163 = vmatprep.subr.bf16.mxu0 %v455_v9 }
  0x37   :  { %p550_p5 = por %p549_p4, %p548_p3 }
  0x38   :  { %332 = vmatpush1.bf16.msra.mxu1 %v478_v27 }
  0x39   :  { %164 = vmatpush1.bf16.msra.mxu0 %v457_v12  ;;  %333 = vmatprep.subr.bf16.mxu1 %v479_v28  ;;  %p551_p6 = pnand %p550_p5, %p544_p2 }
  0x3a   :  { %165 = vmatprep.subr.bf16.mxu0 %v458_v13 }
  0x3c   :  { %334 = vmatpush1.bf16.msra.mxu1 %v481_v29 }
  0x3d   :  { %166 = vmatpush1.bf16.msra.mxu0 %v460_v14  ;;  %335 = vmatprep.subr.bf16.mxu1 %v482_v30  ;;  %v238_v14 = vrot.slane %v420_v4, %v67_v45 }
  0x3e   :  { %167 = vmatprep.subr.bf16.mxu0 %v461_v15 }
  0x40   :  { %336 = vmatpush1.bf16.msra.mxu1 %v484_v31 }
  0x41   :  { %168 = vmatpush1.bf16.msra.mxu0 %v463_v16  ;;  %337 = vmatprep.subr.bf16.mxu1 %v485_v32 }
  0x42   :  { %169 = vmatprep.subr.bf16.mxu0 %v464_v17 }
  0x44   :  { %338 = vmatpush1.bf16.msra.mxu1 %v487_v33 }
  0x45   :  { %170 = vmatpush1.bf16.msra.mxu0 %v466_v18  ;;  %339 = vmatprep.subr.bf16.mxu1 %v488_v34 }
  0x48   :  { %188 = vmatmul.mubr.bf16.vlgmr.msra.gmra.mrb[0].mxu0 %v46_v21  ;;  %340 = vmatpush1.bf16.msra.mxu1 %v490_v35 }
 0x11b   :  { %v189_v41 = vpop.f32.mrb[0].mxu0 }
 0x11c   :  { %v191_v42 = vpop.f32.mrb[1].mxu0  ;;  %v190_v51 = vadd.f32 %v189_v41, %v68_v50 }
 0x11d   :  { %v192_v43 = vadd.f32 %v191_v42, %v72_v40  ;;  %v193_v44 = vpop.f32.mrb[2].mxu0 }
 0x11e   :  { %v195_v46 = vpop.f32.mrb[3].mxu0  ;;  %v194_v52 = vadd.f32 %v193_v44, %v68_v50  ;;  %v198_v53 = vmax.f32 %v190_v51, 0.0 }
 0x11f   :  { %v200_v47 = vmul.f32 0.5, %v192_v43  ;;  %v196_v48 = vadd.f32 %v195_v46, %v72_v40 }
 0x120   :  { %v199_v56 = vmax.f32 %v194_v52, 0.0  ;;  %v208_v58 = vsub.f32 %v44_v19, %v198_v53 }
 0x121   :  { %491 = vtanh.f32 %v200_v47  ;;  %v201_v49 = vmul.f32 0.5, %v196_v48 }
 0x122   :  { %v209_v62 = vsub.f32 %v45_v20, %v199_v56 }
 0x123   :  { %493 = vtanh.f32 %v201_v49 }
 0x12b   :  { %v492_v54 = vpop.eup %491 }
 0x12c   :  { %v204_v55 = vmul.f32 0.5, %v492_v54 }
 0x12d   :  { %v494_v57 = vpop.eup %493 }
 0x12e   :  { %v206_v59 = vadd.f32 0.5, %v204_v55  ;;  %v205_v60 = vmul.f32 0.5, %v494_v57 }
 0x130   :  { %v210_v61 = vmul.f32 %v208_v58, %v206_v59  ;;  %v207_v63 = vadd.f32 0.5, %v205_v60 }
 0x132   :  { %v211_v0 = vmul.f32 %v209_v62, %v207_v63  ;;  %v212_v1 = vadd.f32 %v210_v61, %v198_v53 }
 0x134   :  { %v213_v2 = vadd.f32 %v211_v0, %v199_v56 }
 0x136   :  { %v214_v3 = vpack.c.bf16 %v213_v2, %v212_v1 }
 0x138   :  { %358 = vmatmul.mubr.bf16.vlgmr.msra.gmra.mrb[0].mxu1 %v214_v3 }
 0x20b   :  { %v359_v6 = vpop.f32.mrb[0].mxu1 }
 0x20c   :  { %v361_v7 = vpop.f32.mrb[1].mxu1  ;;  %v360_v15 = vadd.f32 %v359_v6, %v238_v14 }
 0x20d   :  { %v362_v8 = vadd.f32 %v361_v7, %v242_v5  ;;  %v363_v9 = vpop.f32.mrb[2].mxu1 }
 0x20e   :  { %v365_v10 = vpop.f32.mrb[3].mxu1  ;;  %v364_v16 = vadd.f32 %v363_v9, %v238_v14  ;;  %v368_v17 = vmax.f32 %v360_v15, 0.0 }
 0x20f   :  { %v370_v11 = vmul.f32 0.5, %v362_v8  ;;  %v366_v12 = vadd.f32 %v365_v10, %v242_v5 }
 0x210   :  { %v369_v20 = vmax.f32 %v364_v16, 0.0  ;;  %v378_v22 = vsub.f32 %v212_v1, %v368_v17 }
 0x211   :  { %495 = vtanh.f32 %v370_v11  ;;  %v371_v13 = vmul.f32 0.5, %v366_v12 }
 0x212   :  { %v379_v26 = vsub.f32 %v213_v2, %v369_v20 }
 0x213   :  { %497 = vtanh.f32 %v371_v13 }
 0x21b   :  { %v496_v18 = vpop.eup %495 }
 0x21c   :  { %v374_v19 = vmul.f32 0.5, %v496_v18 }
 0x21d   :  { %v498_v21 = vpop.eup %497 }
 0x21e   :  { %v376_v23 = vadd.f32 0.5, %v374_v19  ;;  %v375_v24 = vmul.f32 0.5, %v498_v21 }
 0x220   :  { %v380_v25 = vmul.f32 %v378_v22, %v376_v23  ;;  %v377_v27 = vadd.f32 0.5, %v375_v24 }
 0x222   :  { %v381_v28 = vmul.f32 %v379_v26, %v377_v27  ;;  %v382_v29 = vadd.f32 %v380_v25, %v368_v17 }
 0x224   :  { %v383_v30 = vadd.f32 %v381_v28, %v369_v20  ;;  %384 = vst [vmem:[#allocation7] sm:$0xff] %v382_v29 }
 0x226   :  { %385 = vst [vmem:[#allocation7 + $0x8] sm:$0xff] %v383_v30 }
 0x227   :  { %554 = shalt.err (!%p551_p6)
}
 0x228   :  { %s555_s17 = scalar_lea.hbm %s651_s3, 256 }
 0x229   :  { %p556_p7 = scmp.ne.s32.totalorder %s651_s3, %s555_s17  ;;  %p559_p8 = scmp.lt.u32.totalorder %s555_s17, %s651_s3 }
 0x22b   :  { %p561_p9 = pnand %p559_p8, %p556_p7 }
 0x22d   :  { %564 = shalt.err (!%p561_p9)
}
 0x22e   :  { %397 = dma.vmem_to_hbm [thread:$0]  %s392_s13, 256, %s651_s3, [#allocation4], %s572_s22, %s572_s22, %s573_s23  }
 0x22f   :  { %569 = dma.done.wait [#allocation4], 256  }
 0x230   :  { %570 = vsyncadd [#allocation4], 4294967040 }
 0x231   :  { %401 = vsyncpa [#allocation3], 1 }
 0x232   :  { %402 = vsyncpa [#allocation6], 1 }
 0x233   :  { %403 = vsyncpa [#allocation4], 1 }

</bundles_post_ra>
